<compile_context>
chip_gen: v7x
topology: tpu7x:2x2x1
jax: 0.10.0
libtpu: 0.0.40
codegen_flags: <defaults>
</compile_context>

<pallas_src>
import functools

import jax
import jax.numpy as jnp
from jax.experimental import pallas as pl
from jax.experimental.pallas import tpu as pltpu


# ----------------------------------------------------------------------------
# tiling helpers
# ----------------------------------------------------------------------------
def _pick_tile(dim, target, unit):
    """Largest tile <= target that divides `dim` and is a multiple of `unit`.

    Falls back to the full dim (always legal: block == full array dim)."""
    if dim <= target:
        return dim
    t = (target // unit) * unit
    while t >= unit:
        if dim % t == 0:
            return t
        t -= unit
    return dim


# default tile targets: MXU-sized (multiples of 256 for v6e/v7x, >=128 for v5e)
# but small enough that 2x double-buffered inputs + f32 accumulator stay a few
# MiB, well under the scoped-VMEM limit on every generation (incl. v7x 64 MiB).
_TM, _TN, _TK = 256, 512, 512
_LN_TM = 256


# ----------------------------------------------------------------------------
# Pallas kernels
# ----------------------------------------------------------------------------
def _gelu_tanh(x):
    # tanh-approx GeLU (EUP tanh instead of a chain of VPU mul/adds).
    c = 0.7978845608028654  # sqrt(2/pi)
    return 0.5 * x * (1.0 + jnp.tanh(c * (x + 0.044715 * x * x * x)))


def _matmul_kernel(x_ref, w_ref, b_ref, o_ref, acc_ref, *, act):
    k = pl.program_id(2)

    @pl.when(k == 0)
    def _():
        acc_ref[...] = jnp.zeros_like(acc_ref)

    acc_ref[...] += jnp.dot(x_ref[...], w_ref[...],
                            preferred_element_type=jnp.float32)

    @pl.when(k == pl.num_programs(2) - 1)
    def _():
        y = acc_ref[...] + b_ref[...]
        if act == "gelu":
            y = _gelu_tanh(y)
        elif act == "tanh":
            y = jnp.tanh(y)
        o_ref[...] = y.astype(o_ref.dtype)


def linear(x, w, b, act=None):
    """y = act(x @ w + b). x: [M, K], w: [K, N], b: [N]. Tiled + pipelined."""
    M, K = x.shape
    N = w.shape[1]
    tm = _pick_tile(M, _TM, 8)
    tn = _pick_tile(N, _TN, 128)
    tk = _pick_tile(K, _TK, 128)
    grid = (M // tm, N // tn, K // tk)
    return pl.pallas_call(
        functools.partial(_matmul_kernel, act=act),
        out_shape=jax.ShapeDtypeStruct((M, N), x.dtype),
        grid=grid,
        in_specs=[
            pl.BlockSpec((tm, tk), lambda i, j, k: (i, k)),
            pl.BlockSpec((tk, tn), lambda i, j, k: (k, j)),
            pl.BlockSpec((1, tn), lambda i, j, k: (0, j)),
        ],
        out_specs=pl.BlockSpec((tm, tn), lambda i, j, k: (i, j)),
        scratch_shapes=[pltpu.VMEM((tm, tn), jnp.float32)],
        compiler_params=pltpu.CompilerParams(
            dimension_semantics=("parallel", "parallel", "arbitrary")),
    )(x, w, b.reshape(1, N))


def _ln_kernel(x_ref, g_ref, b_ref, o_ref):
    x = x_ref[...].astype(jnp.float32)
    mean = jnp.mean(x, axis=-1, keepdims=True)
    xc = x - mean
    var = jnp.mean(xc * xc, axis=-1, keepdims=True)
    y = xc * jax.lax.rsqrt(var + 1e-12)          # FusedLayerNorm eps=1e-12
    o_ref[...] = (y * g_ref[...] + b_ref[...]).astype(o_ref.dtype)


def _add_ln_kernel(x_ref, r_ref, g_ref, b_ref, o_ref):
    x = x_ref[...].astype(jnp.float32) + r_ref[...].astype(jnp.float32)
    mean = jnp.mean(x, axis=-1, keepdims=True)
    xc = x - mean
    var = jnp.mean(xc * xc, axis=-1, keepdims=True)
    y = xc * jax.lax.rsqrt(var + 1e-12)
    o_ref[...] = (y * g_ref[...] + b_ref[...]).astype(o_ref.dtype)


def layer_norm(x, g, b, residual=None):
    """LayerNorm(x [+ residual]) over the last dim; rows tiled/pipelined."""
    M, H = x.shape
    tm = _pick_tile(M, _LN_TM, 8)
    grid = (M // tm,)
    row_spec = pl.BlockSpec((tm, H), lambda i: (i, 0))
    vec_spec = pl.BlockSpec((1, H), lambda i: (0, 0))
    params = pltpu.CompilerParams(dimension_semantics=("parallel",))
    if residual is None:
        return pl.pallas_call(
            _ln_kernel,
            out_shape=jax.ShapeDtypeStruct((M, H), x.dtype),
            grid=grid,
            in_specs=[row_spec, vec_spec, vec_spec],
            out_specs=row_spec,
            compiler_params=params,
        )(x, g.reshape(1, H), b.reshape(1, H))
    return pl.pallas_call(
        _add_ln_kernel,
        out_shape=jax.ShapeDtypeStruct((M, H), x.dtype),
        grid=grid,
        in_specs=[row_spec, row_spec, vec_spec, vec_spec],
        out_specs=row_spec,
        compiler_params=params,
    )(x, residual, g.reshape(1, H), b.reshape(1, H))


def _attn_kernel(qkv_ref, m_ref, o_ref, *, num_heads, hidden, scale):
    qkv = qkv_ref[0]                      # (S, 3H) fused q|k|v
    m = m_ref[0]                          # (1, Sk) additive mask
    dH = hidden // num_heads
    outs = []
    for h in range(num_heads):            # static unroll over heads
        qh = qkv[:, h * dH:(h + 1) * dH]
        kh = qkv[:, hidden + h * dH: hidden + (h + 1) * dH]
        vh = qkv[:, 2 * hidden + h * dH: 2 * hidden + (h + 1) * dH]
        s = jnp.dot(qh, kh.T, preferred_element_type=jnp.float32) * scale + m
        s = s - jnp.max(s, axis=-1, keepdims=True)
        p = jnp.exp(s)
        p = p * pl.reciprocal(jnp.sum(p, axis=-1, keepdims=True), approx=True)
        outs.append(jnp.dot(p, vh, preferred_element_type=jnp.float32))
    # single lane-dense (S, H) store
    o_ref[0] = jnp.concatenate(outs, axis=-1).astype(o_ref.dtype)


def mha_attention(qkv, mask_add, num_heads):
    """qkv: [B, S, 3H] (fused q|k|v); mask_add: [B, 1, S] additive.

    Returns context [B, S, H]; one grid step handles all heads of a batch."""
    B, S, H3 = qkv.shape
    H = H3 // 3
    dH = H // num_heads
    scale = 1.0 / float(dH) ** 0.5
    kernel = functools.partial(_attn_kernel, num_heads=num_heads,
                               hidden=H, scale=scale)
    return pl.pallas_call(
        kernel,
        out_shape=jax.ShapeDtypeStruct((B, S, H), qkv.dtype),
        grid=(B,),
        in_specs=[
            pl.BlockSpec((1, S, H3), lambda b: (b, 0, 0)),
            pl.BlockSpec((1, 1, S), lambda b: (b, 0, 0)),
        ],
        out_specs=pl.BlockSpec((1, S, H), lambda b: (b, 0, 0)),
        compiler_params=pltpu.CompilerParams(
            dimension_semantics=("parallel",)),
    )(qkv, mask_add)


# ----------------------------------------------------------------------------
# Model (glue around the kernels)
# ----------------------------------------------------------------------------
def bert_layer(p, x, mask_add, num_heads):
    B, S, H = x.shape
    x2 = x.reshape(B * S, H)
    # fused Q/K/V projection: one matmul to [B*S, 3H]
    qkv = linear(x2, p["qkv_w"], p["qkv_b"]).reshape(B, S, 3 * H)
    ctx = mha_attention(qkv, mask_add, num_heads)          # [B, S, H]
    attn_out = linear(ctx.reshape(B * S, H), p["ao_w"], p["ao_b"])
    h1 = layer_norm(attn_out, p["ao_ln_g"], p["ao_ln_b"], residual=x2)
    inter = linear(h1, p["i_w"], p["i_b"], act="gelu")
    out = linear(inter, p["o_w"], p["o_b"])
    h2 = layer_norm(out, p["o_ln_g"], p["o_ln_b"], residual=h1)
    return h2.reshape(B, S, H)


def two_flow_pooler(p, hidden, mask):
    # TODO(synk): BertTwoFlowPooler source not provided; implemented as masked
    # mean pooling over the sequence followed by dense + tanh.
    mask_f = mask.astype(hidden.dtype)
    summed = jnp.sum(hidden * mask_f[:, :, None], axis=1)
    denom = jnp.maximum(jnp.sum(mask_f, axis=1, keepdims=True), 1.0)
    pooled = summed / denom
    return linear(pooled, p["w"], p["b"], act="tanh")


def uniter_two_flow_forward(params, batch, cfg):
    """Two-flow forward with fusion=True, output_all_encoded_layers=False.

    Returns (txt_pooled_output, img_pooled_output, fusion_encoded_layers[-1]).
    """
    input_ids = batch["input_ids"]          # [B, Lt] int
    position_ids = batch["position_ids"]    # [B, Lt] int
    img_feat = batch["img_feat"]            # [B, Li, img_dim]
    img_pos_feat = batch["img_pos_feat"]    # [B, Li, 7]
    attn = batch["attn_masks"]              # [B, Lt+Li]
    attn_txt = batch["attn_masks_txt"]      # [B, Lt]
    attn_img = batch["attn_masks_img"]      # [B, Li]
    gather_index = batch["gather_index"]    # [B, Lt+Li]

    dt = jnp.float32
    ext = ((1.0 - attn.astype(dt)) * -10000.0)[:, None, :]
    ext_txt = ((1.0 - attn_txt.astype(dt)) * -10000.0)[:, None, :]
    ext_img = ((1.0 - attn_img.astype(dt)) * -10000.0)[:, None, :]

    H = cfg["hidden_size"]
    nH = cfg["num_attention_heads"]
    B, Li, img_dim = img_feat.shape
    Lt = input_ids.shape[1]

    # --- UniterImageEmbeddings (img_masks=None) ---
    ife = img_feat.reshape(B * Li, img_dim)
    ipf = img_pos_feat.reshape(B * Li, 7)
    t_im = layer_norm(linear(ife, params["img_linear_w"], params["img_linear_b"]),
                      params["img_ln_g"], params["img_ln_b"])
    t_pos = layer_norm(linear(ipf, params["pos_linear_w"], params["pos_linear_b"]),
                       params["pos_ln_g"], params["pos_ln_b"])
    img_embd = layer_norm(t_im, params["img_emb_ln_g"], params["img_emb_ln_b"],
                          residual=t_pos).reshape(B, Li, H)

    # --- UniterTextEmbeddings (two_flow: no token-type embedding) ---
    we = jnp.take(params["word_emb"], input_ids, axis=0).reshape(B * Lt, H)
    pe = jnp.take(params["pos_emb"], position_ids, axis=0).reshape(B * Lt, H)
    txt_embd = layer_norm(we, params["txt_ln_g"], params["txt_ln_b"],
                          residual=pe).reshape(B, Lt, H)

    # --- separate encoders ---
    h_img = img_embd
    for lp in params["img_layers"]:
        h_img = bert_layer(lp, h_img, ext_img, nH)
    h_txt = txt_embd
    for lp in params["txt_layers"]:
        h_txt = bert_layer(lp, h_txt, ext_txt, nH)

    # --- gather_embeddings + fusion encoder ---
    cat = jnp.concatenate([h_txt, h_img], axis=1)                    # [B, Lt+Li, H]
    gi = jnp.broadcast_to(gather_index[:, :, None], (B, Lt + Li, H))
    fusion_in = jnp.take_along_axis(cat, gi, axis=1)
    h_fus = fusion_in
    for lp in params["fusion_layers"]:
        h_fus = bert_layer(lp, h_fus, ext, nH)

    # --- poolers ---
    txt_pooled = two_flow_pooler(params["txt_pooler"], h_txt, attn_txt)
    img_pooled = two_flow_pooler(params["img_pooler"], h_img, attn_img)
    return txt_pooled, img_pooled, h_fus


# ----------------------------------------------------------------------------
# Deterministic parameter init (init_weights: Linear/Embedding ~ N(0, 0.02),
# LayerNorm weight=1 bias=0, Linear bias=0)
# ----------------------------------------------------------------------------
def _normal(key, shape, std=0.02):
    return std * jax.random.normal(key, shape, dtype=jnp.float32)


def init_bert_layer(key, H, I):
    ks = jax.random.split(key, 4)
    return {
        # fused QKV projection weights [H, 3H] / bias [3H]
        "qkv_w": _normal(ks[0], (H, 3 * H)), "qkv_b": jnp.zeros((3 * H,), jnp.float32),
        "ao_w": _normal(ks[1], (H, H)), "ao_b": jnp.zeros((H,), jnp.float32),
        "ao_ln_g": jnp.ones((H,), jnp.float32), "ao_ln_b": jnp.zeros((H,), jnp.float32),
        "i_w": _normal(ks[2], (H, I)), "i_b": jnp.zeros((I,), jnp.float32),
        "o_w": _normal(ks[3], (I, H)), "o_b": jnp.zeros((H,), jnp.float32),
        "o_ln_g": jnp.ones((H,), jnp.float32), "o_ln_b": jnp.zeros((H,), jnp.float32),
    }


def init_params(key, cfg):
    H, I = cfg["hidden_size"], cfg["intermediate_size"]
    ks = iter(jax.random.split(key, 10))
    params = {
        "word_emb": _normal(next(ks), (cfg["vocab_size"], H)),
        "pos_emb": _normal(next(ks), (cfg["max_position_embeddings"], H)),
        "txt_ln_g": jnp.ones((H,), jnp.float32), "txt_ln_b": jnp.zeros((H,), jnp.float32),
        "img_linear_w": _normal(next(ks), (cfg["img_dim"], H)),
        "img_linear_b": jnp.zeros((H,), jnp.float32),
        "img_ln_g": jnp.ones((H,), jnp.float32), "img_ln_b": jnp.zeros((H,), jnp.float32),
        "pos_linear_w": _normal(next(ks), (7, H)),
        "pos_linear_b": jnp.zeros((H,), jnp.float32),
        "pos_ln_g": jnp.ones((H,), jnp.float32), "pos_ln_b": jnp.zeros((H,), jnp.float32),
        "img_emb_ln_g": jnp.ones((H,), jnp.float32), "img_emb_ln_b": jnp.zeros((H,), jnp.float32),
        "txt_pooler": {"w": _normal(next(ks), (H, H)), "b": jnp.zeros((H,), jnp.float32)},
        "img_pooler": {"w": _normal(next(ks), (H, H)), "b": jnp.zeros((H,), jnp.float32)},
    }
    params["txt_layers"] = [init_bert_layer(k, H, I)
                            for k in jax.random.split(next(ks), cfg["txt_encoder_layers"])]
    params["img_layers"] = [init_bert_layer(k, H, I)
                            for k in jax.random.split(next(ks), cfg["img_encoder_layers"])]
    params["fusion_layers"] = [init_bert_layer(k, H, I)
                               for k in jax.random.split(next(ks), cfg["fusion_encoder_layers"])]
    return params


# ----------------------------------------------------------------------------
if __name__ == "__main__":
    cfg = dict(
        hidden_size=32, num_attention_heads=4, intermediate_size=128,
        vocab_size=50, max_position_embeddings=64, img_dim=16,
        txt_encoder_layers=2, img_encoder_layers=2, fusion_encoder_layers=2,
    )
    B, Lt, Li = 2, 8, 8

    key = jax.random.PRNGKey(0)
    pkey, dkey = jax.random.split(key)
    params = init_params(pkey, cfg)

    ks = jax.random.split(dkey, 3)
    input_ids = jax.random.randint(ks[0], (B, Lt), 1, cfg["vocab_size"], dtype=jnp.int32)
    position_ids = jnp.broadcast_to(jnp.arange(Lt, dtype=jnp.int32), (B, Lt))
    img_feat = jax.random.normal(ks[1], (B, Li, cfg["img_dim"]), dtype=jnp.float32)
    img_pos_feat = jax.random.uniform(ks[2], (B, Li, 7), dtype=jnp.float32)

    attn_masks_txt = jnp.ones((B, Lt), jnp.int32).at[1, Lt - 1].set(0)
    attn_masks_img = jnp.ones((B, Li), jnp.int32)
    attn_masks = jnp.concatenate([attn_masks_txt, attn_masks_img], axis=1)
    gather_index = jnp.broadcast_to(jnp.arange(Lt + Li, dtype=jnp.int32), (B, Lt + Li))

    batch = {
        "input_ids": input_ids, "position_ids": position_ids,
        "img_feat": img_feat, "img_pos_feat": img_pos_feat,
        "attn_masks": attn_masks, "attn_masks_txt": attn_masks_txt,
        "attn_masks_img": attn_masks_img, "gather_index": gather_index,
    }

    txt_pooled, img_pooled, fusion_out = uniter_two_flow_forward(params, batch, cfg)
    jax.block_until_ready((txt_pooled, img_pooled, fusion_out))

    assert txt_pooled.shape == (B, cfg["hidden_size"])
    assert img_pooled.shape == (B, cfg["hidden_size"])
    assert fusion_out.shape == (B, Lt + Li, cfg["hidden_size"])
    print("KERNEL_OK")
</pallas_src>

<mosaic_0001>
module attributes {stable_mosaic.version = 11 : i64} {
  func.func @_matmul_kernel(%arg0: i32, %arg1: i32, %arg2: i32, %arg3: memref<16x16xf32, #tpu.memory_space<vmem>>, %arg4: memref<16x32xf32, #tpu.memory_space<vmem>>, %arg5: memref<1x32xf32, #tpu.memory_space<vmem>>, %arg6: memref<16x32xf32, #tpu.memory_space<vmem>>, %arg7: memref<16x32xf32, #tpu.memory_space<vmem>>) attributes {dimension_semantics = [#tpu.dimension_semantics<parallel>, #tpu.dimension_semantics<parallel>, #tpu.dimension_semantics<arbitrary>], iteration_bounds = array<i64: 1, 1, 1>, scalar_prefetch = 0 : i64, scratch_operands = 1 : i64, tpu.core_type = #tpu.core_type<tc>, window_params = [{transform_indices = @transform_0, window_bounds = array<i64: 16, 16>}, {transform_indices = @transform_1, window_bounds = array<i64: 16, 32>}, {transform_indices = @transform_2, window_bounds = array<i64: 1, 32>}, {transform_indices = @transform_3, window_bounds = array<i64: 16, 32>}]} {
    %c0_i32 = arith.constant 0 : i32
    %0 = arith.cmpi eq, %arg2, %c0_i32 : i32
    %1 = arith.extui %0 : i1 to i32
    %c0_i32_0 = arith.constant 0 : i32
    %2 = arith.cmpi ne, %1, %c0_i32_0 : i32
    scf.if %2 {
      %cst_10 = arith.constant 0.000000e+00 : f32
      %12 = vector.broadcast %cst_10 : f32 to vector<16x32xf32>
      %c0_11 = arith.constant 0 : index
      %c0_12 = arith.constant 0 : index
      %13 = vector.load %arg7[%c0_11, %c0_12] : memref<16x32xf32, #tpu.memory_space<vmem>>, vector<16x32xf32>
      tpu.vector_store %arg7[%c0_11, %c0_12], %12 {strides = array<i32>} : memref<16x32xf32, #tpu.memory_space<vmem>>, vector<16x32xf32>,
    } else {
    }
    %c0 = arith.constant 0 : index
    %c0_1 = arith.constant 0 : index
    %3 = vector.load %arg7[%c0, %c0_1] : memref<16x32xf32, #tpu.memory_space<vmem>>, vector<16x32xf32>
    %c0_2 = arith.constant 0 : index
    %c0_3 = arith.constant 0 : index
    %4 = vector.load %arg3[%c0_2, %c0_3] : memref<16x16xf32, #tpu.memory_space<vmem>>, vector<16x16xf32>
    %c0_4 = arith.constant 0 : index
    %c0_5 = arith.constant 0 : index
    %5 = vector.load %arg4[%c0_4, %c0_5] : memref<16x32xf32, #tpu.memory_space<vmem>>, vector<16x32xf32>
    %cst = arith.constant dense<0.000000e+00> : vector<16x32xf32>
    %6 = tpu.matmul %4, %5, %cst {dimension_numbers = #tpu.dot_dimension_numbers<[1], [0], [0], [1], [0, 0, 1, 1], [], []>} : vector<16x16xf32>, vector<16x32xf32>, vector<16x32xf32> -> vector<16x32xf32>
    %7 = arith.addf %3, %6 : vector<16x32xf32>
    %c0_6 = arith.constant 0 : index
    %c0_7 = arith.constant 0 : index
    %8 = vector.load %arg7[%c0_6, %c0_7] : memref<16x32xf32, #tpu.memory_space<vmem>>, vector<16x32xf32>
    tpu.vector_store %arg7[%c0_6, %c0_7], %7 {strides = array<i32>} : memref<16x32xf32, #tpu.memory_space<vmem>>, vector<16x32xf32>,
    %c0_i32_8 = arith.constant 0 : i32
    %9 = arith.cmpi eq, %arg2, %c0_i32_8 : i32
    %10 = arith.extui %9 : i1 to i32
    %c0_i32_9 = arith.constant 0 : i32
    %11 = arith.cmpi ne, %10, %c0_i32_9 : i32
    scf.if %11 {
      %c0_10 = arith.constant 0 : index
      %c0_11 = arith.constant 0 : index
      %12 = vector.load %arg7[%c0_10, %c0_11] : memref<16x32xf32, #tpu.memory_space<vmem>>, vector<16x32xf32>
      %c0_12 = arith.constant 0 : index
      %c0_13 = arith.constant 0 : index
      %13 = vector.load %arg5[%c0_12, %c0_13] : memref<1x32xf32, #tpu.memory_space<vmem>>, vector<1x32xf32>
      %14 = vector.broadcast %13 : vector<1x32xf32> to vector<16x32xf32>
      %15 = arith.addf %12, %14 : vector<16x32xf32>
      %c0_14 = arith.constant 0 : index
      %c0_15 = arith.constant 0 : index
      %16 = vector.load %arg6[%c0_14, %c0_15] : memref<16x32xf32, #tpu.memory_space<vmem>>, vector<16x32xf32>
      tpu.vector_store %arg6[%c0_14, %c0_15], %15 {strides = array<i32>} : memref<16x32xf32, #tpu.memory_space<vmem>>, vector<16x32xf32>,
    } else {
    }
    return
  }
  func.func @transform_0(%arg0: i32, %arg1: i32, %arg2: i32) -> (i32, i32) {
    %c0_i32 = arith.constant 0 : i32
    return %arg0, %arg2 : i32, i32
  }
  func.func @transform_1(%arg0: i32, %arg1: i32, %arg2: i32) -> (i32, i32) {
    %c0_i32 = arith.constant 0 : i32
    return %arg2, %arg1 : i32, i32
  }
  func.func @transform_2(%arg0: i32, %arg1: i32, %arg2: i32) -> (i32, i32) {
    %c0_i32 = arith.constant 0 : i32
    %c0_i32_0 = arith.constant 0 : i32
    return %c0_i32, %arg1 : i32, i32
  }
  func.func @transform_3(%arg0: i32, %arg1: i32, %arg2: i32) -> (i32, i32) {
    %c0_i32 = arith.constant 0 : i32
    return %arg0, %arg1 : i32, i32
  }
}

</mosaic_0001>

<bundles_post_ra>
// kernel: tpu_custom_call.1
= control target key start
LH: loop header
LB: loop body
LE: loop exit
PB: predicated region body
PF: predicated region fallthrough
CT: control target
= control target key end

     0   :  { %8 = vsyncpa [#allocation4], 0  ;;  %s353_s0 = inlined_call_operand.hbm [shape: f32[16,16], index: 0, kind: input, shape index: {}]   ;;  %s354_s1 = inlined_call_operand.hbm [shape: f32[16,32], index: 1, kind: input, shape index: {}]   ;;  %s355_s2 = inlined_call_operand.vmem [shape: f32[1,32], index: 2, kind: input, shape index: {}]   ;;  %s356_s3 = inlined_call_operand.hbm [shape: f32[16,32], index: 3, kind: output, shape index: {}]  }
   0x1   :  { %9 = vsyncpa [#allocation7], 0 }
   0x2   :  { %10 = vsyncpa [#allocation5], 0  ;;  %s273_s12 = smov [#allocation3]   ;;  %s201_s16 = scalar_lea.hbm %s353_s0, 256 }
   0x3   :  { %s16_s13 = sshll.u32 %s273_s12, 4  ;;  %p202_p0 = scmp.ne.s32.totalorder %s353_s0, %s201_s16  ;;  %s17_s13 = int_to_ptr.vmem [resolvable:$true] %s16_s13 }
   0x4   :  { %p205_p1 = scmp.lt.u32.totalorder %s201_s16, %s353_s0 }
   0x6   :  { %p207_p2 = pnand %p205_p1, %p202_p0 }
   0x8   :  { %210 = shalt.err (!%p207_p2)
}
   0x9   :  { %s211_s21 = scalar_lea.vmem %s17_s13, 256  ;;  %p216_p4 = scmp.lt.s32.totalorder %s17_s13, %s17_s13 }
   0xa   :  { %p212_p3 = scmp.ne.s32.totalorder %s17_s13, %s211_s21  ;;  %p217_p5 = scmp.lt.s32.totalorder %s211_s21, %s211_s21 }
   0xc   :  { %p218_p6 = por %p217_p5, %p216_p4 }
   0xe   :  { %p219_p7 = pnand %p218_p6, %p212_p3 }
  0x10   :  { %222 = shalt.err (!%p219_p7)
}
  0x11   :  { %s274_s22 = smov 128   ;;  %s275_s23 = smov 8  }
  0x12   :  { %22 = dma.hbm_to_vmem [thread:$0]  %s353_s0, 256, %s17_s13, [#allocation4], %s274_s22, %s274_s22, %s275_s23  }
  0x13   :  { %s276_s26 = smov [#allocation6]   ;;  %s223_s30 = scalar_lea.hbm %s354_s1, 256 }
  0x14   :  { %s28_s27 = sshll.u32 %s276_s26, 4  ;;  %p224_p8 = scmp.ne.s32.totalorder %s354_s1, %s223_s30  ;;  %s29_s27 = int_to_ptr.vmem [resolvable:$true] %s28_s27 }
  0x15   :  { %p227_p9 = scmp.lt.u32.totalorder %s223_s30, %s354_s1 }
  0x17   :  { %p229_p10 = pnand %p227_p9, %p224_p8 }
  0x19   :  { %232 = shalt.err (!%p229_p10)
}
  0x1a   :  { %s233_s8 = scalar_lea.vmem %s29_s27, 256  ;;  %p238_p12 = scmp.lt.s32.totalorder %s29_s27, %s29_s27 }
  0x1b   :  { %p234_p11 = scmp.ne.s32.totalorder %s29_s27, %s233_s8  ;;  %p239_p13 = scmp.lt.s32.totalorder %s233_s8, %s233_s8 }
  0x1d   :  { %p240_p0 = por %p239_p13, %p238_p12 }
  0x1f   :  { %p241_p1 = pnand %p240_p0, %p234_p11 }
  0x21   :  { %244 = shalt.err (!%p241_p1)
}
  0x22   :  { %34 = dma.hbm_to_vmem [thread:$0]  %s354_s1, 256, %s29_s27, [#allocation7], %s274_s22, %s274_s22, %s275_s23  }
  0x23   :  { %267 = dma.done.wait [#allocation4], 256  }
  0x24   :  { %268 = vsyncadd [#allocation4], 4294967040 }
  0x25   :  { %269 = dma.done.wait [#allocation7], 256  }
  0x26   :  { %270 = vsyncadd [#allocation7], 4294967040  ;;  %vm47_vm0 = vcmask 261120   ;;  %v277_v0 = vmov 0.0   ;;  %vm56_vm1 = vcmask 130048   ;;  %v54_v1 = vld [vmem:[#allocation6] sm:$0xff] }
  0x27   :  { %49 = vst.msk [vmem:[#allocation2 + $0x8] sm:$0xff] %vm47_vm0, %v277_v0  ;;  %48 = vst.msk [vmem:[#allocation2] sm:$0xff] %vm47_vm0, %v277_v0  ;;  %v55_v2 = vld [vmem:[#allocation6 + $0x8] sm:$0xff]  ;;  %v52_v3 = vld [vmem:[#allocation3] sm:$0xff]  ;;  %s278_s11 = smov [#allocation8]  }
  0x28   :  { %v191_v4 = vpack.c.bf16 %v55_v2, %v54_v1  ;;  %188 = vmatprep.mubr.msk.f32.mxu0 %vm56_vm1, %v52_v3  ;;  %v53_v5 = vld [vmem:[#allocation3 + $0x8] sm:$0xff]  ;;  %v179_v12 = vld [vmem:[%s355_s2] ss:$0 sm:$0xff]  ;;  %s164_s12 = sshll.u32 %s278_s11, 4  ;;  %s165_s12 = int_to_ptr.vmem [resolvable:$true] %s164_s12 }
  0x29   :  { %s245_s13 = scalar_lea.vmem %s165_s12, 256  ;;  %p250_p3 = scmp.lt.s32.totalorder %s165_s12, %s165_s12 }
  0x2a   :  { %192 = vmatprep.subr.bf16.mxu0 %v191_v4  ;;  %p246_p2 = scmp.ne.s32.totalorder %s165_s12, %s245_s13  ;;  %p251_p4 = scmp.lt.s32.totalorder %s245_s13, %s245_s13 }
  0x2b   :  { %194 = vmatpush3.bf16.msra.mxu0 %v191_v4 }
  0x2c   :  { %p252_p5 = por %p251_p4, %p250_p3 }
  0x2e   :  { %189 = vmatmul.mubr.msk.f32.vlgmr.msra.gmra.mrb[0].mxu0 %vm56_vm1, %v53_v5  ;;  %v51_v6 = vld [vmem:[#allocation2 + $0x8] sm:$0xff]  ;;  %v50_v7 = vld [vmem:[#allocation2] sm:$0xff]  ;;  %p253_p6 = pnand %p252_p5, %p246_p2 }
 0x101   :  { %v190_v8 = vpop.f32.mrb[0].mxu0 }
 0x102   :  { %v139_v9 = vadd.f32 %v190_v8, %v51_v6  ;;  %v129_v10 = vpop.f32.mrb[1].mxu0 }
 0x103   :  { %v138_v11 = vadd.f32 %v129_v10, %v50_v7 }
 0x104   :  { %142 = vst.msk [vmem:[#allocation2 + $0x8] sm:$0xff] %vm47_vm0, %v139_v9 }
 0x105   :  { %141 = vst.msk [vmem:[#allocation2] sm:$0xff] %vm47_vm0, %v138_v11 }
 0x10b   :  { %v147_v13 = vld [vmem:[#allocation2 + $0x8] sm:$0xff] }
 0x10c   :  { %v146_v14 = vld [vmem:[#allocation2] sm:$0xff]  ;;  %v156_v15 = vadd.f32 %v179_v12, %v147_v13 }
 0x10d   :  { %v155_v16 = vadd.f32 %v179_v12, %v146_v14 }
 0x10e   :  { %158 = vst.msk [vmem:[#allocation8 + $0x8] sm:$0xff] %vm47_vm0, %v156_v15 }
 0x10f   :  { %157 = vst.msk [vmem:[#allocation8] sm:$0xff] %vm47_vm0, %v155_v16 }
 0x110   :  { %256 = shalt.err (!%p253_p6)
}
 0x111   :  { %s257_s15 = scalar_lea.hbm %s356_s3, 256 }
 0x112   :  { %p258_p7 = scmp.ne.s32.totalorder %s356_s3, %s257_s15  ;;  %p261_p8 = scmp.lt.u32.totalorder %s257_s15, %s356_s3 }
 0x114   :  { %p263_p9 = pnand %p261_p8, %p258_p7 }
 0x116   :  { %266 = shalt.err (!%p263_p9)
}
 0x117   :  { %170 = dma.vmem_to_hbm [thread:$0]  %s165_s12, 256, %s356_s3, [#allocation5], %s274_s22, %s274_s22, %s275_s23  }
 0x118   :  { %271 = dma.done.wait [#allocation5], 256  }
 0x119   :  { %272 = vsyncadd [#allocation5], 4294967040 }
 0x11a   :  { %174 = vsyncpa [#allocation4], 1 }
 0x11b   :  { %175 = vsyncpa [#allocation7], 1 }
 0x11c   :  { %176 = vsyncpa [#allocation5], 1 }

</bundles_post_ra>
